<compile_context>
chip_gen: v6e
topology: v6e:2x2x1
jax: 0.10.0
libtpu: 0.0.40
codegen_flags: <defaults>
</compile_context>

<pallas_src>
import jax
import jax.numpy as jnp
from jax import lax
from jax.experimental import pallas as pl
from jax.experimental.pallas import tpu as pltpu


def _round_up(x, m):
    return (x + m - 1) // m * m


# ---------------------------------------------------------------------------
# Kernels: one (or two, when patch windows overlap) MXU matmuls + bias,
# f32 accumulation regardless of activation dtype.
# ---------------------------------------------------------------------------
def _proj_kernel(x_ref, w_ref, b_ref, o_ref):
    acc = jnp.dot(x_ref[...], w_ref[...], preferred_element_type=jnp.float32)
    o_ref[...] = (acc + b_ref[...]).astype(o_ref.dtype)


def _proj_spill_kernel(x_ref, s_ref, w_ref, ws_ref, b_ref, o_ref):
    acc = jnp.dot(x_ref[...], w_ref[...], preferred_element_type=jnp.float32)
    acc = acc + jnp.dot(s_ref[...], ws_ref[...], preferred_element_type=jnp.float32)
    o_ref[...] = (acc + b_ref[...]).astype(o_ref.dtype)


def make_sensor_patches(weights, biases, patch_size, time_step, *,
                        tokens_per_block=32768,
                        activation_dtype=jnp.float32,
                        vmem_limit_bytes=32 * 1024 * 1024):
    """Builds forward(inp) -> (B, L, D) for the SensorPatches module.

    weights: list (one per modality) of torch-layout Conv1d weights (O, Cin, K).
    biases:  list (one per modality) of (O,) biases.
    All weight packing below runs once at construction time.
    """
    num_modal = len(weights)
    half_dim, cin, k_w = weights[0].shape
    K = int(patch_size)
    S = int(time_step)
    assert k_w == K, (k_w, K)
    proj_dim = half_dim * num_modal
    C = cin * num_modal

    # Lane-dense packing: G tokens per output row so stores are full 128-lane.
    if proj_dim % 128 == 0:
        d_pad, G = proj_dim, 1
    elif proj_dim < 128:
        d_pad = 1 << (proj_dim - 1).bit_length()          # next pow2 divides 128
        G = 128 // d_pad
    else:
        d_pad, G = _round_up(proj_dim, 128), 1

    spill_w = max(0, K - S)          # overlap (time steps) into the next packed row
    kin_main = G * S * C             # raw input elements per packed row
    kin_spill = spill_w * C
    n_out = G * d_pad

    # --- pack weights ONCE -------------------------------------------------
    # torch Conv1d weight (O, Cin, K) -> (K, Cin, O): windows stay in the raw
    # (time, channel) order, so no activation transpose / im2col is needed.
    w_flat = jnp.zeros((K, C, proj_dim), jnp.float32)
    b_full = jnp.zeros((proj_dim,), jnp.float32)
    for m in range(num_modal):
        w_perm = jnp.transpose(jnp.asarray(weights[m], jnp.float32), (2, 1, 0))
        w_flat = w_flat.at[:, m * cin:(m + 1) * cin,
                           m * half_dim:(m + 1) * half_dim].set(w_perm)
        b_full = b_full.at[m * half_dim:(m + 1) * half_dim].set(
            jnp.asarray(biases[m], jnp.float32))
    w_flat = w_flat.reshape(K * C, proj_dim)

    # Banded weight over one packed row: token g within the row reads input
    # offsets [g*S*C, g*S*C + K*C); the part past the row width is read from
    # the small spill operand (first K-S time steps of the next row).
    w_band = jnp.zeros((kin_main + kin_spill, n_out), jnp.float32)
    b_pack = jnp.zeros((1, n_out), jnp.float32)
    for g in range(G):
        w_band = w_band.at[g * S * C:g * S * C + K * C,
                           g * d_pad:g * d_pad + proj_dim].set(w_flat)
        b_pack = b_pack.at[0, g * d_pad:g * d_pad + proj_dim].set(b_full)
    w_main = w_band[:kin_main].astype(activation_dtype)
    w_spill = w_band[kin_main:].astype(activation_dtype) if kin_spill else None

    act_bytes = jnp.dtype(activation_dtype).itemsize
    bytes_per_row = act_bytes * (kin_main + kin_spill) + 4 * n_out

    def forward(inp):
        B, T, C_in = inp.shape
        assert C_in == C, (C_in, C)
        L = (T - K) // S + 1
        n_packed = pl.cdiv(L, G)             # packed rows per batch element
        rows = B * n_packed

        # ---- glue: contiguous chunking (free reshape), no window duplication.
        t_main = n_packed * G * S
        t_need = t_main + (G * S if 0 < spill_w <= G * S else spill_w)
        x = inp.astype(activation_dtype)
        if t_need > T:
            x = jnp.pad(x, ((0, 0), (0, t_need - T), (0, 0)))
        x_main = x[:, :t_main, :].reshape(B * n_packed, kin_main)

        if spill_w == 0:
            spill = None
        elif spill_w <= G * S:
            # spill for row g = first K-S time steps of row g+1:
            # contiguous reshape + tiny last-dim slice (only overlap bytes move).
            spill = x[:, G * S:t_main + G * S, :].reshape(B, n_packed, kin_main)
            spill = spill[:, :, :kin_spill].reshape(B * n_packed, kin_spill)
        else:
            starts = (jnp.arange(n_packed) + 1) * (G * S)
            idx = starts[:, None] + jnp.arange(spill_w)[None, :]
            spill = x[:, idx, :].reshape(B * n_packed, kin_spill)

        # ---- tile sizing: big blocks, VMEM-budgeted, bounded padding,
        #      keep several parallel blocks alive for v7x's two TensorCores.
        rows_cap = min(tokens_per_block // G,
                       (vmem_limit_bytes // 2) // (2 * bytes_per_row))
        rows_cap = max(8, rows_cap // 8 * 8)
        num_blocks = pl.cdiv(rows, rows_cap)
        num_blocks = max(num_blocks, min(8, pl.cdiv(rows, 256)))
        rows_per_block = _round_up(pl.cdiv(rows, num_blocks), 8)
        num_blocks = pl.cdiv(rows, rows_per_block)
        rows_pad = rows_per_block * num_blocks
        if rows_pad > rows:
            x_main = jnp.pad(x_main, ((0, rows_pad - rows), (0, 0)))
            if spill is not None:
                spill = jnp.pad(spill, ((0, rows_pad - rows), (0, 0)))

        cost = pl.CostEstimate(
            flops=2 * rows_pad * (kin_main + kin_spill) * n_out,
            transcendentals=0,
            bytes_accessed=bytes_per_row * rows_pad
            + act_bytes * (kin_main + kin_spill) * n_out + 4 * n_out,
        )

        def row_spec(shape):
            return pl.BlockSpec(shape, lambda i: (i, 0))

        def rep_spec(shape):
            return pl.BlockSpec(shape, lambda i: (0, 0))

        if spill is None:
            kernel = _proj_kernel
            operands = (x_main, w_main, b_pack)
            in_specs = [row_spec((rows_per_block, kin_main)),
                        rep_spec((kin_main, n_out)),
                        rep_spec((1, n_out))]
            fuse = [True, False, False]
        else:
            kernel = _proj_spill_kernel
            operands = (x_main, spill, w_main, w_spill, b_pack)
            in_specs = [row_spec((rows_per_block, kin_main)),
                        row_spec((rows_per_block, kin_spill)),
                        rep_spec((kin_main, n_out)),
                        rep_spec((kin_spill, n_out)),
                        rep_spec((1, n_out))]
            fuse = [True, True, False, False, False]

        out_packed = pl.pallas_call(
            kernel,
            out_shape=jax.ShapeDtypeStruct((rows_pad, n_out), jnp.float32),
            grid=(num_blocks,),
            in_specs=in_specs,
            out_specs=row_spec((rows_per_block, n_out)),
            compiler_params=pltpu.CompilerParams(
                dimension_semantics=("parallel",),
                allow_input_fusion=fuse,
                vmem_limit_bytes=vmem_limit_bytes),
            cost_estimate=cost,
        )(*operands)

        # Packed (rows, G*d_pad) row-major == (rows*G, d_pad) row-major: free reshape.
        out = out_packed[:rows].reshape(B, n_packed * G, d_pad)
        return out[:, :L, :proj_dim]

    return forward


def _reference_forward(inp, weights, biases, patch_size, time_step):
    """Pure-JAX reference using lax conv (mirrors torch Conv1d NCW)."""
    num_modal = len(weights)
    cin = inp.shape[-1] // num_modal
    outs = []
    for m, (w, b) in enumerate(zip(weights, biases)):
        x = jnp.transpose(inp[:, :, m * cin:(m + 1) * cin], (0, 2, 1))  # (B, cin, T)
        y = lax.conv_general_dilated(
            x, jnp.asarray(w, jnp.float32), window_strides=(time_step,),
            padding="VALID", dimension_numbers=("NCH", "OIH", "NCH"))
        outs.append(y + jnp.asarray(b, jnp.float32)[None, :, None])
    concat = jnp.concatenate(outs, axis=1)          # (B, D, L)
    return jnp.transpose(concat, (0, 2, 1))         # (B, L, D)


if __name__ == "__main__":
    B, T, num_modal = 2, 16, 2
    projection_dim = 32
    half_dim = projection_dim // num_modal

    key = jax.random.PRNGKey(0)
    k_inp, k_w0, k_b0, k_w1, k_b1 = jax.random.split(key, 5)
    inp = jax.random.normal(k_inp, (B, T, 3 * num_modal), dtype=jnp.float32)

    # (patchSize, timeStep): overlapping, non-overlapping, non-divisible stride.
    for patch_size, time_step in [(4, 2), (4, 4), (3, 2)]:
        fan_in = 3 * patch_size
        bound = 1.0 / (fan_in ** 0.5)
        weights = [
            jax.random.uniform(k_w0, (half_dim, 3, patch_size), jnp.float32, -bound, bound),
            jax.random.uniform(k_w1, (half_dim, 3, patch_size), jnp.float32, -bound, bound),
        ]
        biases = [
            jax.random.uniform(k_b0, (half_dim,), jnp.float32, -bound, bound),
            jax.random.uniform(k_b1, (half_dim,), jnp.float32, -bound, bound),
        ]

        fwd = jax.jit(make_sensor_patches(weights, biases, patch_size, time_step))
        out = jax.block_until_ready(fwd(inp))

        ref = _reference_forward(inp, weights, biases, patch_size, time_step)
        assert out.shape == ref.shape, (out.shape, ref.shape)
        err = float(jnp.max(jnp.abs(out - ref)))
        assert jnp.allclose(out, ref, atol=1e-5, rtol=1e-5), (patch_size, time_step, err)

    print("KERNEL_OK")
</pallas_src>

<mosaic_0001>
module attributes {stable_mosaic.version = 11 : i64} {
  func.func @_proj_spill_kernel(%arg0: i32, %arg1: memref<8x48xf32, #tpu.memory_space<vmem>>, %arg2: memref<8x12xf32, #tpu.memory_space<vmem>>, %arg3: memref<48x128xf32, #tpu.memory_space<vmem>>, %arg4: memref<12x128xf32, #tpu.memory_space<vmem>>, %arg5: memref<1x128xf32, #tpu.memory_space<vmem>>, %arg6: memref<8x128xf32, #tpu.memory_space<vmem>>) attributes {dimension_semantics = [#tpu.dimension_semantics<parallel>], iteration_bounds = array<i64: 1>, scalar_prefetch = 0 : i64, scratch_operands = 0 : i64, tpu.core_type = #tpu.core_type<tc>, window_params = [{transform_indices = @transform_0, window_bounds = array<i64: 8, 48>}, {transform_indices = @transform_1, window_bounds = array<i64: 8, 12>}, {pipeline_mode = #tpu.pipeline_mode<synchronous>, transform_indices = @transform_2, window_bounds = array<i64: 48, 128>}, {pipeline_mode = #tpu.pipeline_mode<synchronous>, transform_indices = @transform_3, window_bounds = array<i64: 12, 128>}, {pipeline_mode = #tpu.pipeline_mode<synchronous>, transform_indices = @transform_4, window_bounds = array<i64: 1, 128>}, {transform_indices = @transform_5, window_bounds = array<i64: 8, 128>}]} {
    %c0 = arith.constant 0 : index
    %c0_0 = arith.constant 0 : index
    %0 = vector.load %arg1[%c0, %c0_0] : memref<8x48xf32, #tpu.memory_space<vmem>>, vector<8x48xf32>
    %c0_1 = arith.constant 0 : index
    %c0_2 = arith.constant 0 : index
    %1 = vector.load %arg3[%c0_1, %c0_2] : memref<48x128xf32, #tpu.memory_space<vmem>>, vector<48x128xf32>
    %cst = arith.constant dense<0.000000e+00> : vector<8x128xf32>
    %2 = tpu.matmul %0, %1, %cst {dimension_numbers = #tpu.dot_dimension_numbers<[1], [0], [0], [1], [0, 0, 1, 1], [], []>} : vector<8x48xf32>, vector<48x128xf32>, vector<8x128xf32> -> vector<8x128xf32>
    %c0_3 = arith.constant 0 : index
    %c0_4 = arith.constant 0 : index
    %3 = vector.load %arg2[%c0_3, %c0_4] : memref<8x12xf32, #tpu.memory_space<vmem>>, vector<8x12xf32>
    %c0_5 = arith.constant 0 : index
    %c0_6 = arith.constant 0 : index
    %4 = vector.load %arg4[%c0_5, %c0_6] : memref<12x128xf32, #tpu.memory_space<vmem>>, vector<12x128xf32>
    %cst_7 = arith.constant dense<0.000000e+00> : vector<8x128xf32>
    %5 = tpu.matmul %3, %4, %cst_7 {dimension_numbers = #tpu.dot_dimension_numbers<[1], [0], [0], [1], [0, 0, 1, 1], [], []>} : vector<8x12xf32>, vector<12x128xf32>, vector<8x128xf32> -> vector<8x128xf32>
    %6 = arith.addf %2, %5 : vector<8x128xf32>
    %c0_8 = arith.constant 0 : index
    %c0_9 = arith.constant 0 : index
    %7 = vector.load %arg5[%c0_8, %c0_9] : memref<1x128xf32, #tpu.memory_space<vmem>>, vector<1x128xf32>
    %8 = vector.broadcast %7 : vector<1x128xf32> to vector<8x128xf32>
    %9 = arith.addf %6, %8 : vector<8x128xf32>
    %c0_10 = arith.constant 0 : index
    %c0_11 = arith.constant 0 : index
    %10 = vector.load %arg6[%c0_10, %c0_11] : memref<8x128xf32, #tpu.memory_space<vmem>>, vector<8x128xf32>
    tpu.vector_store %arg6[%c0_10, %c0_11], %9 {strides = array<i32>} : memref<8x128xf32, #tpu.memory_space<vmem>>, vector<8x128xf32>,
    return
  }
  func.func @transform_0(%arg0: i32) -> (i32, i32) {
    %c0_i32 = arith.constant 0 : i32
    %c0_i32_0 = arith.constant 0 : i32
    return %arg0, %c0_i32 : i32, i32
  }
  func.func @transform_1(%arg0: i32) -> (i32, i32) {
    %c0_i32 = arith.constant 0 : i32
    %c0_i32_0 = arith.constant 0 : i32
    return %arg0, %c0_i32 : i32, i32
  }
  func.func @transform_2(%arg0: i32) -> (i32, i32) {
    %c0_i32 = arith.constant 0 : i32
    %c0_i32_0 = arith.constant 0 : i32
    %c0_i32_1 = arith.constant 0 : i32
    return %c0_i32, %c0_i32_0 : i32, i32
  }
  func.func @transform_3(%arg0: i32) -> (i32, i32) {
    %c0_i32 = arith.constant 0 : i32
    %c0_i32_0 = arith.constant 0 : i32
    %c0_i32_1 = arith.constant 0 : i32
    return %c0_i32, %c0_i32_0 : i32, i32
  }
  func.func @transform_4(%arg0: i32) -> (i32, i32) {
    %c0_i32 = arith.constant 0 : i32
    %c0_i32_0 = arith.constant 0 : i32
    %c0_i32_1 = arith.constant 0 : i32
    return %c0_i32, %c0_i32_0 : i32, i32
  }
  func.func @transform_5(%arg0: i32) -> (i32, i32) {
    %c0_i32 = arith.constant 0 : i32
    %c0_i32_0 = arith.constant 0 : i32
    return %arg0, %c0_i32 : i32, i32
  }
}

</mosaic_0001>

<bundles_post_ra>
// kernel: forward.2
= control target key start
LH: loop header
LB: loop body
LE: loop exit
PB: predicated region body
PF: predicated region fallthrough
CT: control target
= control target key end

     0   :  { %vm65_vm0 = vcmask 1043456   ;;  %v24_v2 = vlaneseq  ;;  %v264_v3 = vmov 0.0   ;;  %vm61_vm3 = vcmask 97280   ;;  %s340_s0 = inlined_call_operand.vmem [shape: f32[48,128], index: 0, kind: input, shape index: {}]   ;;  %s341_s1 = inlined_call_operand.vmem [shape: f32[12,128], index: 1, kind: input, shape index: {}]   ;;  %s342_s2 = inlined_call_operand.vmem [shape: f32[1,128], index: 2, kind: input, shape index: {}]   ;;  %s343_s3 = inlined_call_operand.vmem [shape: f32[4,12], index: 3, kind: input, shape index: {}]   ;;  %s344_s4 = inlined_call_operand.<no memory space> [shape: f32[], index: 4, kind: input, shape index: {}]   ;;  %s345_s5 = inlined_call_operand.vmem [shape: f32[4,48], index: 5, kind: input, shape index: {}]   ;;  %s346_s6 = inlined_call_operand.vmem [shape: f32[8,128], index: 6, kind: output, shape index: {}]  }
   0x1   :  { %v11_v0 = vstv %s344_s4  ;;  %v57_v1 = vld [vmem:[%s340_s0 + $0x28] sm:$0xff]  ;;  %247 = vmatprep.subr.mxu1 %v264_v3  ;;  %v56_v4 = vld [vmem:[%s340_s0 + $0x20] sm:$0xff]  ;;  %240 = vmatprep.subr.mxu0 %v264_v3  ;;  %v55_v10 = vld [vmem:[%s340_s0 + $0x18] sm:$0xff]  ;;  %vm265_vm4 = vmmov 0   ;;  %vm139_vm6 = vcmask 392192  }
   0x2   :  { %v60_v5 = vld [vmem:[%s341_s1 + $0x8] sm:$0xf]  ;;  %v59_v6 = vld [vmem:[%s341_s1] sm:$0xff]  ;;  %248 = vmatpush3.msra.mxu1 %v57_v1  ;;  %v25_v7 = vshrl.u32 %v24_v2, 7  ;;  %v30_v8 = vand.u32 127, %v24_v2  ;;  %v54_v12 = vld [vmem:[%s340_s0 + $0x10] sm:$0xff]  ;;  %244 = vmatprep.mubr.msk.f32.mxu0 %vm265_vm4, %v264_v3 }
   0x3   :  { %241 = vmatpush3.msk.msra.mxu0 %vm65_vm0, %v60_v5  ;;  %v37_v9 = vld [vmem:[%s343_s3] sm:$0xf]  ;;  %249 = vmatprep.subr.mxu1 %v264_v3  ;;  %v53_v15 = vld [vmem:[%s340_s0 + $0x8] sm:$0xff] }
   0x4   :  { %242 = vmatprep.subr.mxu0 %v264_v3  ;;  %250 = vmatpush3.msra.mxu1 %v56_v4  ;;  %vm27_vm1 = vcmp.lt.s32.totalorder %v25_v7, 4  ;;  %vm46_vm2 = vcmp.lt.s32.totalorder %v30_v8, 12  ;;  %v23_v11 = vld [vmem:[%s345_s5] sm:$0xf]  ;;  %vm32_vm5 = vcmp.lt.s32.totalorder %v30_v8, 48 }
   0x5   :  { %243 = vmatpush3.msra.mxu0 %v59_v6  ;;  %251 = vmatprep.subr.mxu1 %v264_v3  ;;  %v42_v13 = vsel %vm27_vm1, %v37_v9, %v11_v0  ;;  %v28_v16 = vsel %vm27_vm1, %v23_v11, %v11_v0  ;;  %v52_v17 = vld [vmem:[%s340_s0] sm:$0xff] }
   0x6   :  { %252 = vmatpush3.msra.mxu1 %v55_v10  ;;  %v47_v14 = vsel %vm46_vm2, %v42_v13, %v11_v0  ;;  %259 = vmatprep.mubr.msk.f32.mxu1 %vm265_vm4, %v264_v3  ;;  %v33_v18 = vsel %vm32_vm5, %v28_v16, %v11_v0  ;;  %v229_v22 = vld [vmem:[%s342_s2] ss:$0 sm:$0xff] }
   0x7   :  { %253 = vmatprep.subr.mxu1 %v264_v3  ;;  %245 = vmatmul.mubr.msk.f32.vlgmr.msra.gmra.mxu0 %vm61_vm3, %v47_v14 }
   0x8   :  { %254 = vmatpush3.msra.mxu1 %v54_v12 }
   0x9   :  { %255 = vmatprep.subr.mxu1 %v264_v3 }
   0xa   :  { %256 = vmatpush3.msra.mxu1 %v53_v15 }
   0xb   :  { %257 = vmatprep.subr.mxu1 %v264_v3 }
   0xc   :  { %258 = vmatpush3.msra.mxu1 %v52_v17 }
   0xd   :  { %260 = vmatmul.mubr.msk.f32.vlgmr.msra.gmra.mxu1 %vm139_vm6, %v33_v18 }
  0xc7   :  { %v135_v19 = vpop.f32.mrf.mxu0 }
  0xc9   :  { %v246_v20 = vpop.f32.mrf.mxu0 }
  0xcd   :  { %v209_v21 = vpop.f32.mrf.mxu1 }
  0xce   :  { %v210_v23 = vadd.f32 %v209_v21, %v135_v19 }
  0xcf   :  { %v261_v24 = vpop.f32.mrf.mxu1 }
  0xd0   :  { %v220_v25 = vadd.f32 %v229_v22, %v210_v23 }
  0xd2   :  { %221 = vst [vmem:[%s346_s6] sm:$0xff] %v220_v25 }

</bundles_post_ra>
